<compile_context>
chip_gen: v7x
topology: tpu7x:2x2x1
jax: 0.10.0
libtpu: 0.0.40
codegen_flags: <defaults>
</compile_context>

<pallas_src>
import jax
import jax.numpy as jnp
import numpy as np
from jax.experimental import pallas as pl
from jax.experimental.pallas import tpu as pltpu

MAX_LENGTH = 26
HIDDEN_SIZE = 32
OUTPUT_SIZE = 40   # vocab size

H, V, ML = HIDDEN_SIZE, OUTPUT_SIZE, MAX_LENGTH
LANES = 128        # lane width of the packed weight slab / packed output row

assert 4 * H <= LANES, "fused GRU block needs 4H lanes"
assert V <= LANES and ML <= LANES and 2 * H <= LANES
assert V + H + ML <= LANES, "packed output row must fit in one 128-lane row"

NEG_BIG = -1e30    # finite "-inf" for masking padded logits


def _a8(n):        # round up to a sublane multiple
    return (n + 7) // 8 * 8


# Static, 8-aligned row offsets inside the packed weight slab (256 rows total).
ROW_WA = 0                        # W_attn      (2H, ML)  in lanes [:ML]
ROW_BA = ROW_WA + 2 * H           # b_attn      (1, ML)
ROW_WC = _a8(ROW_BA + 1)          # W_combine   (2H, H)   in lanes [:H]
ROW_BC = ROW_WC + 2 * H           # b_combine   (1, H)
ROW_WG = _a8(ROW_BC + 1)          # fused GRU   (2H, 4H)  [r-sum | z-sum | gi_n | gh_n]
ROW_BG = ROW_WG + 2 * H           # fused GRU bias (1, 4H)
ROW_WO = _a8(ROW_BG + 1)          # W_out       (H, V)    in lanes [:V]
ROW_BO = ROW_WO + H               # b_out       (1, V)
N_ROWS = _a8(ROW_BO + 1)          # total slab rows (256)


def attn_decoder_kernel(tok_ref,   # scalar prefetch (SMEM) int32 (T,) -- consumed by index_map
                        emb_ref,   # (1, 1, H)      gathered embedding row for this step
                        hid0_ref,  # (1, H)         initial hidden state (read at step 0)
                        enc_ref,   # (LANES, H)     encoder outputs, zero-padded rows >= ML
                        w_ref,     # (N_ROWS, 128)  packed weight slab (resident)
                        out_ref,   # (1, 1, 128)    packed [logp | h_new | attn_w | pad]
                        h_sc):     # VMEM (1, H)    hidden-state carry across grid steps
    step = pl.program_id(0)

    @pl.when(step == 0)
    def _():
        h_sc[...] = hid0_ref[...]

    x = emb_ref[0]                                        # (1, H); dropout = identity (eval)
    h = h_sc[...]                                         # (1, H) carried hidden
    lane = jax.lax.broadcasted_iota(jnp.int32, (1, LANES), 1)

    # --- attention_weights = softmax(Linear(cat(x, h))) -------------------------
    xh = jnp.concatenate([x, h], axis=1)                  # (1, 2H)
    logits_a = (jnp.dot(xh, w_ref[ROW_WA:ROW_WA + 2 * H, :],
                        preferred_element_type=jnp.float32)
                + w_ref[ROW_BA:ROW_BA + 1, :])            # (1, 128), full-lane RHS
    logits_a = jnp.where(lane < ML, logits_a, NEG_BIG)
    m = jnp.max(logits_a, axis=1, keepdims=True)
    e = jnp.exp(logits_a - m)                             # padded lanes -> exactly 0
    attn_w = e * pl.reciprocal(jnp.sum(e, axis=1, keepdims=True), approx=True)   # (1, 128)

    # --- attention_applied = bmm(attn_w, encoder_outputs) ------------------------
    # enc is zero-padded to 128 rows and attn_w is zero past ML -> exact, no slicing.
    attn_applied = jnp.dot(attn_w, enc_ref[...],
                           preferred_element_type=jnp.float32)                   # (1, H)

    # --- attention_combine(cat(x, attn_applied)) -> ReLU -------------------------
    xa = jnp.concatenate([x, attn_applied], axis=1)       # (1, 2H)
    comb = (jnp.dot(xa, w_ref[ROW_WC:ROW_WC + 2 * H, :],
                    preferred_element_type=jnp.float32)
            + w_ref[ROW_BC:ROW_BC + 1, :])                # (1, 128)
    g = jnp.maximum(comb[:, :H], 0.0)                     # (1, H) GRU input

    # --- single GRU step, ONE fused matmul (PyTorch gate order [r, z, n]) --------
    gh_cat = jnp.concatenate([g, h], axis=1)              # (1, 2H)
    gru = (jnp.dot(gh_cat, w_ref[ROW_WG:ROW_WG + 2 * H, :],
                   preferred_element_type=jnp.float32)
           + w_ref[ROW_BG:ROW_BG + 1, :])                 # (1, 128) = [r|z|gi_n|gh_n]
    r = jax.nn.sigmoid(gru[:, 0:H])
    z = jax.nn.sigmoid(gru[:, H:2 * H])
    n = jnp.tanh(gru[:, 2 * H:3 * H] + r * gru[:, 3 * H:4 * H])
    h_new = (1.0 - z) * n + z * h                         # (1, H)
    h_sc[...] = h_new                                     # carry to next step

    # --- output = log_softmax(out(h_new)) ----------------------------------------
    logits_o = (jnp.dot(h_new, w_ref[ROW_WO:ROW_WO + H, :],
                        preferred_element_type=jnp.float32)
                + w_ref[ROW_BO:ROW_BO + 1, :])            # (1, 128)
    logits_o = jnp.where(lane < V, logits_o, NEG_BIG)
    lm = jnp.max(logits_o, axis=1, keepdims=True)
    sh = logits_o - lm
    logp = sh - jnp.log(jnp.sum(jnp.exp(sh), axis=1, keepdims=True))

    # --- single lane-dense packed store per step ----------------------------------
    pad = jnp.zeros((1, LANES - (V + H + ML)), jnp.float32)
    out_ref[0] = jnp.concatenate([logp[:, :V], h_new, attn_w[:, :ML], pad], axis=1)


def attn_decoder_decode(tokens, hidden, encoder_outputs, kp):
    """Teacher-forced multi-step decode in ONE pallas_call.

    tokens: int32 (T,); hidden: (1,1,H); encoder_outputs: (ML, H).
    Returns (log_probs (T,V), hiddens (T,H), attn_weights (T,ML)).
    """
    tokens = jnp.clip(tokens.astype(jnp.int32), 0, V - 1)   # VMEM has no runtime OOB check
    T = tokens.shape[0]
    h0 = hidden.reshape(1, H)
    emb3 = kp["emb"].reshape(V, 1, H)
    enc_pad = jnp.zeros((LANES, H), jnp.float32).at[:ML].set(encoder_outputs)

    packed = pl.pallas_call(
        attn_decoder_kernel,
        out_shape=jax.ShapeDtypeStruct((T, 1, LANES), jnp.float32),
        grid_spec=pltpu.PrefetchScalarGridSpec(
            num_scalar_prefetch=1,
            grid=(T,),
            in_specs=[
                # gather exactly one embedding row per step via the prefetched tokens
                pl.BlockSpec((1, 1, H), lambda i, tok: (tok[i], 0, 0)),
                pl.BlockSpec((1, H),        lambda i, tok: (0, 0)),   # resident
                pl.BlockSpec((LANES, H),    lambda i, tok: (0, 0)),   # resident
                pl.BlockSpec((N_ROWS, LANES), lambda i, tok: (0, 0)), # resident slab
            ],
            out_specs=pl.BlockSpec((1, 1, LANES), lambda i, tok: (i, 0, 0)),
            scratch_shapes=[pltpu.VMEM((1, H), jnp.float32)],          # hidden carry
        ),
        compiler_params=pltpu.CompilerParams(dimension_semantics=("arbitrary",)),
    )(tokens, emb3, h0, enc_pad, kp["slab"])

    packed = packed.reshape(T, LANES)
    logp = packed[:, :V]
    hiddens = packed[:, V:V + H]
    attn_ws = packed[:, V + H:V + H + ML]
    return logp, hiddens, attn_ws


def attn_decoder_forward(tok, hidden, encoder_outputs, kp):
    """Single decode step -- same signature/semantics as the PyTorch module forward."""
    logp, hiddens, attn_ws = attn_decoder_decode(tok.reshape(1), hidden, encoder_outputs, kp)
    return logp, hiddens.reshape(1, 1, H), attn_ws


def make_params(key):
    """Deterministic params in PyTorch layout, plus the packed kernel weight slab."""
    ks = jax.random.split(key, 10)
    s = 0.1
    pt = {
        "emb":    jax.random.normal(ks[0], (V, H), jnp.float32) * s,
        "W_attn": jax.random.normal(ks[1], (ML, 2 * H), jnp.float32) * s,
        "b_attn": jax.random.normal(ks[2], (ML,), jnp.float32) * s,
        "W_comb": jax.random.normal(ks[3], (H, 2 * H), jnp.float32) * s,
        "b_comb": jax.random.normal(ks[4], (H,), jnp.float32) * s,
        "W_ih":   jax.random.normal(ks[5], (3 * H, H), jnp.float32) * s,   # gates [r, z, n]
        "W_hh":   jax.random.normal(ks[6], (3 * H, H), jnp.float32) * s,
        "b_ih":   jax.random.normal(ks[7], (3 * H,), jnp.float32) * s,
        "b_hh":   jax.random.normal(ks[8], (3 * H,), jnp.float32) * s,
        "W_out":  jax.random.normal(ks[9], (V, H), jnp.float32) * s,
        "b_out":  jnp.zeros((V,), jnp.float32),
    }
    Wih, Whh = np.asarray(pt["W_ih"]), np.asarray(pt["W_hh"])
    bih, bhh = np.asarray(pt["b_ih"]), np.asarray(pt["b_hh"])

    slab = np.zeros((N_ROWS, LANES), np.float32)
    slab[ROW_WA:ROW_WA + 2 * H, :ML] = np.asarray(pt["W_attn"]).T        # (2H, ML)
    slab[ROW_BA, :ML]                = np.asarray(pt["b_attn"])
    slab[ROW_WC:ROW_WC + 2 * H, :H]  = np.asarray(pt["W_comb"]).T        # (2H, H)
    slab[ROW_BC, :H]                 = np.asarray(pt["b_comb"])
    # Fused GRU block (2H, 4H): columns [r-sum | z-sum | gi_n | gh_n]
    slab[ROW_WG:ROW_WG + H,        0:H]         = Wih[0:H].T             # W_ir.T
    slab[ROW_WG + H:ROW_WG + 2*H,  0:H]         = Whh[0:H].T             # W_hr.T
    slab[ROW_WG:ROW_WG + H,        H:2 * H]     = Wih[H:2 * H].T         # W_iz.T
    slab[ROW_WG + H:ROW_WG + 2*H,  H:2 * H]     = Whh[H:2 * H].T         # W_hz.T
    slab[ROW_WG:ROW_WG + H,        2 * H:3 * H] = Wih[2 * H:3 * H].T     # W_in.T
    slab[ROW_WG + H:ROW_WG + 2*H,  3 * H:4 * H] = Whh[2 * H:3 * H].T     # W_hn.T
    slab[ROW_BG, 0:H]         = bih[0:H] + bhh[0:H]
    slab[ROW_BG, H:2 * H]     = bih[H:2 * H] + bhh[H:2 * H]
    slab[ROW_BG, 2 * H:3 * H] = bih[2 * H:3 * H]
    slab[ROW_BG, 3 * H:4 * H] = bhh[2 * H:3 * H]
    slab[ROW_WO:ROW_WO + H, :V]      = np.asarray(pt["W_out"]).T         # (H, V)
    slab[ROW_BO, :V]                 = np.asarray(pt["b_out"])

    kp = {"emb": pt["emb"], "slab": jnp.asarray(slab)}
    return pt, kp


def reference_forward(tok, hidden, encoder_outputs, pt):
    """Pure-JAX mirror of the PyTorch forward (eval mode)."""
    x = pt["emb"][tok[0]][None, :]                                  # (1, H)
    h = hidden.reshape(1, H)
    cat1 = jnp.concatenate([x, h], axis=1)
    attn_w = jax.nn.softmax(cat1 @ pt["W_attn"].T + pt["b_attn"], axis=1)
    attn_applied = attn_w @ encoder_outputs
    cat2 = jnp.concatenate([x, attn_applied], axis=1)
    g = jax.nn.relu(cat2 @ pt["W_comb"].T + pt["b_comb"])
    gi = g @ pt["W_ih"].T + pt["b_ih"]
    gh = h @ pt["W_hh"].T + pt["b_hh"]
    r = jax.nn.sigmoid(gi[:, :H] + gh[:, :H])
    z = jax.nn.sigmoid(gi[:, H:2 * H] + gh[:, H:2 * H])
    n = jnp.tanh(gi[:, 2 * H:] + r * gh[:, 2 * H:])
    h_new = (1.0 - z) * n + z * h
    logp = jax.nn.log_softmax(h_new @ pt["W_out"].T + pt["b_out"], axis=1)
    return logp, h_new.reshape(1, 1, H), attn_w


if __name__ == "__main__":
    key = jax.random.PRNGKey(0)
    kp_key, k_tok, k_hid, k_enc = jax.random.split(key, 4)

    pt, kp = make_params(kp_key)

    T = 5                                                             # decode steps in ONE kernel
    tokens = jax.random.randint(k_tok, (T,), 0, V, dtype=jnp.int32)   # teacher-forced tokens
    hidden0 = jax.random.normal(k_hid, (1, 1, H), jnp.float32) * 0.1  # initial hidden
    encoder_outputs = jax.random.normal(k_enc, (ML, H), jnp.float32) * 0.1

    # --- multi-step decode: one pallas_call, hidden carried in VMEM scratch ------
    logp, hiddens, attn_ws = attn_decoder_decode(tokens, hidden0, encoder_outputs, kp)
    jax.block_until_ready((logp, hiddens, attn_ws))

    # Reference: apply the single-step module T times, carrying the hidden state.
    h = hidden0
    ref_logps, ref_hs, ref_as = [], [], []
    for t in range(T):
        rl, h, ra = reference_forward(tokens[t:t + 1], h, encoder_outputs, pt)
        ref_logps.append(rl)
        ref_hs.append(h.reshape(1, H))
        ref_as.append(ra)
    ref_logp = jnp.concatenate(ref_logps, axis=0)
    ref_hid = jnp.concatenate(ref_hs, axis=0)
    ref_attn = jnp.concatenate(ref_as, axis=0)

    # Tolerance loosened (approx=True EUP reciprocal in the attention softmax).
    np.testing.assert_allclose(np.asarray(logp), np.asarray(ref_logp), rtol=5e-3, atol=5e-3)
    np.testing.assert_allclose(np.asarray(hiddens), np.asarray(ref_hid), rtol=5e-3, atol=5e-3)
    np.testing.assert_allclose(np.asarray(attn_ws), np.asarray(ref_attn), rtol=5e-3, atol=5e-3)

    # --- single-step API (exact module-forward semantics) ------------------------
    lp1, h1, a1 = attn_decoder_forward(tokens[:1], hidden0, encoder_outputs, kp)
    jax.block_until_ready((lp1, h1, a1))
    np.testing.assert_allclose(np.asarray(lp1), np.asarray(ref_logps[0]), rtol=5e-3, atol=5e-3)
    np.testing.assert_allclose(np.asarray(h1), np.asarray(ref_hs[0].reshape(1, 1, H)),
                               rtol=5e-3, atol=5e-3)
    np.testing.assert_allclose(np.asarray(a1), np.asarray(ref_as[0]), rtol=5e-3, atol=5e-3)

    print("KERNEL_OK")
</pallas_src>

<mosaic_0001>
module attributes {stable_mosaic.version = 11 : i64} {
  func.func @attn_decoder_kernel(%arg0: i32, %arg1: memref<5xi32, #tpu.memory_space<smem>>, %arg2: memref<1x1x32xf32, #tpu.memory_space<vmem>>, %arg3: memref<1x32xf32, #tpu.memory_space<vmem>>, %arg4: memref<128x32xf32, #tpu.memory_space<vmem>>, %arg5: memref<256x128xf32, #tpu.memory_space<vmem>>, %arg6: memref<1x1x128xf32, #tpu.memory_space<vmem>>, %arg7: memref<1x32xf32, #tpu.memory_space<vmem>>) attributes {dimension_semantics = [#tpu.dimension_semantics<arbitrary>], iteration_bounds = array<i64: 5>, scalar_prefetch = 1 : i64, scratch_operands = 1 : i64, tpu.core_type = #tpu.core_type<tc>, window_params = [{transform_indices = @transform_0, window_bounds = array<i64: 1, 1, 32>}, {pipeline_mode = #tpu.pipeline_mode<synchronous>, transform_indices = @transform_1, window_bounds = array<i64: 1, 32>}, {pipeline_mode = #tpu.pipeline_mode<synchronous>, transform_indices = @transform_2, window_bounds = array<i64: 128, 32>}, {pipeline_mode = #tpu.pipeline_mode<synchronous>, transform_indices = @transform_3, window_bounds = array<i64: 256, 128>}, {transform_indices = @transform_4, window_bounds = array<i64: 1, 1, 128>}]} {
    %c0_i32 = arith.constant 0 : i32
    %0 = arith.cmpi eq, %arg0, %c0_i32 : i32
    %1 = arith.extui %0 : i1 to i32
    %c0_i32_0 = arith.constant 0 : i32
    %2 = arith.cmpi ne, %1, %c0_i32_0 : i32
    scf.if %2 {
      %c0_36 = arith.constant 0 : index
      %c0_37 = arith.constant 0 : index
      %89 = vector.load %arg3[%c0_36, %c0_37] : memref<1x32xf32, #tpu.memory_space<vmem>>, vector<1x32xf32>
      %c0_38 = arith.constant 0 : index
      %c0_39 = arith.constant 0 : index
      %90 = vector.load %arg7[%c0_38, %c0_39] : memref<1x32xf32, #tpu.memory_space<vmem>>, vector<1x32xf32>
      tpu.vector_store %arg7[%c0_38, %c0_39], %89 {strides = array<i32>} : memref<1x32xf32, #tpu.memory_space<vmem>>, vector<1x32xf32>,
    } else {
    }
    %c0 = arith.constant 0 : index
    %c0_1 = arith.constant 0 : index
    %c0_2 = arith.constant 0 : index
    %3 = vector.load %arg2[%c0, %c0_1, %c0_2] : memref<1x1x32xf32, #tpu.memory_space<vmem>>, vector<1x1x32xf32>
    %4 = vector.shape_cast %3 : vector<1x1x32xf32> to vector<1x32xf32>
    %c0_3 = arith.constant 0 : index
    %c0_4 = arith.constant 0 : index
    %5 = vector.load %arg7[%c0_3, %c0_4] : memref<1x32xf32, #tpu.memory_space<vmem>>, vector<1x32xf32>
    %6 = tpu.iota {dimensions = array<i32: 1>} : vector<1x128xi32>
    %7 = tpu.concatenate %4, %5 in 1 : vector<1x32xf32>, vector<1x32xf32> -> vector<1x64xf32>
    %c0_5 = arith.constant 0 : index
    %c0_6 = arith.constant 0 : index
    %8 = vector.load %arg5[%c0_5, %c0_6] : memref<256x128xf32, #tpu.memory_space<vmem>>, vector<64x128xf32>
    %cst = arith.constant dense<0.000000e+00> : vector<1x128xf32>
    %9 = tpu.matmul %7, %8, %cst {dimension_numbers = #tpu.dot_dimension_numbers<[1], [0], [0], [1], [0, 0, 1, 1], [], []>} : vector<1x64xf32>, vector<64x128xf32>, vector<1x128xf32> -> vector<1x128xf32>
    %c64 = arith.constant 64 : index
    %c0_7 = arith.constant 0 : index
    %10 = vector.load %arg5[%c64, %c0_7] : memref<256x128xf32, #tpu.memory_space<vmem>>, vector<1x128xf32>
    %11 = arith.addf %9, %10 : vector<1x128xf32>
    %c26_i32 = arith.constant 26 : i32
    %12 = vector.broadcast %c26_i32 : i32 to vector<1x128xi32>
    %13 = arith.cmpi slt, %6, %12 : vector<1x128xi32>
    %cst_8 = arith.constant -1.000000e+30 : f32
    %14 = vector.broadcast %cst_8 : f32 to vector<1x128xf32>
    %15 = arith.select %13, %11, %14 : vector<1x128xi1>, vector<1x128xf32>
    %cst_9 = arith.constant dense<0xFF800000> : vector<1xf32>
    %16 = vector.multi_reduction <maximumf>, %15, %cst_9 [1] : vector<1x128xf32> to vector<1xf32>
    %17 = vector.shape_cast %16 : vector<1xf32> to vector<1x1xf32>
    %18 = vector.broadcast %17 : vector<1x1xf32> to vector<1x128xf32>
    %19 = arith.subf %15, %18 : vector<1x128xf32>
    %20 = math.exp %19 : vector<1x128xf32>
    %cst_10 = arith.constant dense<0.000000e+00> : vector<1xf32>
    %21 = vector.multi_reduction <add>, %20, %cst_10 [1] : vector<1x128xf32> to vector<1xf32>
    %22 = vector.shape_cast %21 : vector<1xf32> to vector<1x1xf32>
    %23 = tpu.reciprocal %22 {approx = true} : vector<1x1xf32> -> vector<1x1xf32>
    %24 = vector.broadcast %23 : vector<1x1xf32> to vector<1x128xf32>
    %25 = arith.mulf %20, %24 : vector<1x128xf32>
    %c0_11 = arith.constant 0 : index
    %c0_12 = arith.constant 0 : index
    %26 = vector.load %arg4[%c0_11, %c0_12] : memref<128x32xf32, #tpu.memory_space<vmem>>, vector<128x32xf32>
    %cst_13 = arith.constant dense<0.000000e+00> : vector<1x32xf32>
    %27 = tpu.matmul %25, %26, %cst_13 {dimension_numbers = #tpu.dot_dimension_numbers<[1], [0], [0], [1], [0, 0, 1, 1], [], []>} : vector<1x128xf32>, vector<128x32xf32>, vector<1x32xf32> -> vector<1x32xf32>
    %28 = tpu.concatenate %4, %27 in 1 : vector<1x32xf32>, vector<1x32xf32> -> vector<1x64xf32>
    %c72 = arith.constant 72 : index
    %c0_14 = arith.constant 0 : index
    %29 = vector.load %arg5[%c72, %c0_14] : memref<256x128xf32, #tpu.memory_space<vmem>>, vector<64x128xf32>
    %cst_15 = arith.constant dense<0.000000e+00> : vector<1x128xf32>
    %30 = tpu.matmul %28, %29, %cst_15 {dimension_numbers = #tpu.dot_dimension_numbers<[1], [0], [0], [1], [0, 0, 1, 1], [], []>} : vector<1x64xf32>, vector<64x128xf32>, vector<1x128xf32> -> vector<1x128xf32>
    %c136 = arith.constant 136 : index
    %c0_16 = arith.constant 0 : index
    %31 = vector.load %arg5[%c136, %c0_16] : memref<256x128xf32, #tpu.memory_space<vmem>>, vector<1x128xf32>
    %32 = arith.addf %30, %31 : vector<1x128xf32>
    %33 = vector.extract_strided_slice %32 {offsets = [0, 0], sizes = [1, 32], strides = [1, 1]} : vector<1x128xf32> to vector<1x32xf32>
    %cst_17 = arith.constant 0.000000e+00 : f32
    %34 = vector.broadcast %cst_17 : f32 to vector<1x32xf32>
    %35 = arith.maximumf %33, %34 : vector<1x32xf32>
    %36 = tpu.concatenate %35, %5 in 1 : vector<1x32xf32>, vector<1x32xf32> -> vector<1x64xf32>
    %c144 = arith.constant 144 : index
    %c0_18 = arith.constant 0 : index
    %37 = vector.load %arg5[%c144, %c0_18] : memref<256x128xf32, #tpu.memory_space<vmem>>, vector<64x128xf32>
    %cst_19 = arith.constant dense<0.000000e+00> : vector<1x128xf32>
    %38 = tpu.matmul %36, %37, %cst_19 {dimension_numbers = #tpu.dot_dimension_numbers<[1], [0], [0], [1], [0, 0, 1, 1], [], []>} : vector<1x64xf32>, vector<64x128xf32>, vector<1x128xf32> -> vector<1x128xf32>
    %c208 = arith.constant 208 : index
    %c0_20 = arith.constant 0 : index
    %39 = vector.load %arg5[%c208, %c0_20] : memref<256x128xf32, #tpu.memory_space<vmem>>, vector<1x128xf32>
    %40 = arith.addf %38, %39 : vector<1x128xf32>
    %41 = vector.extract_strided_slice %40 {offsets = [0, 0], sizes = [1, 32], strides = [1, 1]} : vector<1x128xf32> to vector<1x32xf32>
    %42 = arith.negf %41 : vector<1x32xf32>
    %43 = math.exp %42 : vector<1x32xf32>
    %cst_21 = arith.constant 1.000000e+00 : f32
    %44 = vector.broadcast %cst_21 : f32 to vector<1x32xf32>
    %45 = arith.addf %44, %43 : vector<1x32xf32>
    %46 = arith.divf %44, %45 : vector<1x32xf32>
    %47 = vector.extract_strided_slice %40 {offsets = [0, 32], sizes = [1, 32], strides = [1, 1]} : vector<1x128xf32> to vector<1x32xf32>
    %48 = arith.negf %47 : vector<1x32xf32>
    %49 = math.exp %48 : vector<1x32xf32>
    %cst_22 = arith.constant 1.000000e+00 : f32
    %50 = vector.broadcast %cst_22 : f32 to vector<1x32xf32>
    %51 = arith.addf %50, %49 : vector<1x32xf32>
    %52 = arith.divf %50, %51 : vector<1x32xf32>
    %53 = vector.extract_strided_slice %40 {offsets = [0, 64], sizes = [1, 32], strides = [1, 1]} : vector<1x128xf32> to vector<1x32xf32>
    %54 = vector.extract_strided_slice %40 {offsets = [0, 96], sizes = [1, 32], strides = [1, 1]} : vector<1x128xf32> to vector<1x32xf32>
    %55 = arith.mulf %46, %54 : vector<1x32xf32>
    %56 = arith.addf %53, %55 : vector<1x32xf32>
    %57 = math.tanh %56 : vector<1x32xf32>
    %cst_23 = arith.constant 1.000000e+00 : f32
    %58 = vector.broadcast %cst_23 : f32 to vector<1x32xf32>
    %59 = arith.subf %58, %52 : vector<1x32xf32>
    %60 = arith.mulf %59, %57 : vector<1x32xf32>
    %61 = arith.mulf %52, %5 : vector<1x32xf32>
    %62 = arith.addf %60, %61 : vector<1x32xf32>
    %c0_24 = arith.constant 0 : index
    %c0_25 = arith.constant 0 : index
    %63 = vector.load %arg7[%c0_24, %c0_25] : memref<1x32xf32, #tpu.memory_space<vmem>>, vector<1x32xf32>
    tpu.vector_store %arg7[%c0_24, %c0_25], %62 {strides = array<i32>} : memref<1x32xf32, #tpu.memory_space<vmem>>, vector<1x32xf32>,
    %c216 = arith.constant 216 : index
    %c0_26 = arith.constant 0 : index
    %64 = vector.load %arg5[%c216, %c0_26] : memref<256x128xf32, #tpu.memory_space<vmem>>, vector<32x128xf32>
    %cst_27 = arith.constant dense<0.000000e+00> : vector<1x128xf32>
    %65 = tpu.matmul %62, %64, %cst_27 {dimension_numbers = #tpu.dot_dimension_numbers<[1], [0], [0], [1], [0, 0, 1, 1], [], []>} : vector<1x32xf32>, vector<32x128xf32>, vector<1x128xf32> -> vector<1x128xf32>
    %c248 = arith.constant 248 : index
    %c0_28 = arith.constant 0 : index
    %66 = vector.load %arg5[%c248, %c0_28] : memref<256x128xf32, #tpu.memory_space<vmem>>, vector<1x128xf32>
    %67 = arith.addf %65, %66 : vector<1x128xf32>
    %c40_i32 = arith.constant 40 : i32
    %68 = vector.broadcast %c40_i32 : i32 to vector<1x128xi32>
    %69 = arith.cmpi slt, %6, %68 : vector<1x128xi32>
    %cst_29 = arith.constant -1.000000e+30 : f32
    %70 = vector.broadcast %cst_29 : f32 to vector<1x128xf32>
    %71 = arith.select %69, %67, %70 : vector<1x128xi1>, vector<1x128xf32>
    %cst_30 = arith.constant dense<0xFF800000> : vector<1xf32>
    %72 = vector.multi_reduction <maximumf>, %71, %cst_30 [1] : vector<1x128xf32> to vector<1xf32>
    %73 = vector.shape_cast %72 : vector<1xf32> to vector<1x1xf32>
    %74 = vector.broadcast %73 : vector<1x1xf32> to vector<1x128xf32>
    %75 = arith.subf %71, %74 : vector<1x128xf32>
    %76 = math.exp %75 : vector<1x128xf32>
    %cst_31 = arith.constant dense<0.000000e+00> : vector<1xf32>
    %77 = vector.multi_reduction <add>, %76, %cst_31 [1] : vector<1x128xf32> to vector<1xf32>
    %78 = vector.shape_cast %77 : vector<1xf32> to vector<1x1xf32>
    %79 = math.log %78 : vector<1x1xf32>
    %80 = vector.broadcast %79 : vector<1x1xf32> to vector<1x128xf32>
    %81 = arith.subf %75, %80 : vector<1x128xf32>
    %cst_32 = arith.constant 0.000000e+00 : f32
    %82 = vector.broadcast %cst_32 : f32 to vector<1x30xf32>
    %83 = vector.extract_strided_slice %81 {offsets = [0, 0], sizes = [1, 40], strides = [1, 1]} : vector<1x128xf32> to vector<1x40xf32>
    %84 = vector.extract_strided_slice %25 {offsets = [0, 0], sizes = [1, 26], strides = [1, 1]} : vector<1x128xf32> to vector<1x26xf32>
    %85 = tpu.concatenate %83, %62, %84, %82 in 1 : vector<1x40xf32>, vector<1x32xf32>, vector<1x26xf32>, vector<1x30xf32> -> vector<1x128xf32>
    %c0_33 = arith.constant 0 : index
    %c0_34 = arith.constant 0 : index
    %c0_35 = arith.constant 0 : index
    %86 = vector.load %arg6[%c0_33, %c0_34, %c0_35] : memref<1x1x128xf32, #tpu.memory_space<vmem>>, vector<1x1x128xf32>
    %87 = vector.shape_cast %86 : vector<1x1x128xf32> to vector<1x128xf32>
    %88 = vector.shape_cast %85 : vector<1x128xf32> to vector<1x1x128xf32>
    tpu.vector_store %arg6[%c0_33, %c0_34, %c0_35], %88 {strides = array<i32>} : memref<1x1x128xf32, #tpu.memory_space<vmem>>, vector<1x1x128xf32>,
    return
  }
  func.func @transform_0(%arg0: i32, %arg1: memref<5xi32, #tpu.memory_space<smem>>) -> (i32, i32, i32) {
    %0 = arith.index_cast %arg0 : i32 to index
    %1 = memref.load %arg1[%0] : memref<5xi32, #tpu.memory_space<smem>>
    %c0_i32 = arith.constant 0 : i32
    %c0_i32_0 = arith.constant 0 : i32
    %c0_i32_1 = arith.constant 0 : i32
    return %1, %c0_i32, %c0_i32_0 : i32, i32, i32
  }
  func.func @transform_1(%arg0: i32, %arg1: memref<5xi32, #tpu.memory_space<smem>>) -> (i32, i32) {
    %c0_i32 = arith.constant 0 : i32
    %c0_i32_0 = arith.constant 0 : i32
    %c0_i32_1 = arith.constant 0 : i32
    return %c0_i32, %c0_i32_0 : i32, i32
  }
  func.func @transform_2(%arg0: i32, %arg1: memref<5xi32, #tpu.memory_space<smem>>) -> (i32, i32) {
    %c0_i32 = arith.constant 0 : i32
    %c0_i32_0 = arith.constant 0 : i32
    %c0_i32_1 = arith.constant 0 : i32
    return %c0_i32, %c0_i32_0 : i32, i32
  }
  func.func @transform_3(%arg0: i32, %arg1: memref<5xi32, #tpu.memory_space<smem>>) -> (i32, i32) {
    %c0_i32 = arith.constant 0 : i32
    %c0_i32_0 = arith.constant 0 : i32
    %c0_i32_1 = arith.constant 0 : i32
    return %c0_i32, %c0_i32_0 : i32, i32
  }
  func.func @transform_4(%arg0: i32, %arg1: memref<5xi32, #tpu.memory_space<smem>>) -> (i32, i32, i32) {
    %c0_i32 = arith.constant 0 : i32
    %c0_i32_0 = arith.constant 0 : i32
    %c0_i32_1 = arith.constant 0 : i32
    return %arg0, %c0_i32, %c0_i32_0 : i32, i32, i32
  }
}

</mosaic_0001>

<bundles_post_ra>
// kernel: tpu_custom_call.1
= control target key start
LH: loop header
LB: loop body
LE: loop exit
PB: predicated region body
PF: predicated region fallthrough
CT: control target
= control target key end

     0   :  { %s1538_s0 = inlined_call_operand.vmem [shape: s32[5], index: 0, kind: input, shape index: {}]   ;;  %s1539_s1 = inlined_call_operand.vmem [shape: f32[40,1,32], index: 1, kind: input, shape index: {}]   ;;  %s1540_s2 = inlined_call_operand.vmem [shape: f32[1,32], index: 2, kind: input, shape index: {}]   ;;  %s1541_s3 = inlined_call_operand.vmem [shape: f32[128,32], index: 3, kind: input, shape index: {}]   ;;  %s1542_s4 = inlined_call_operand.hbm [shape: f32[256,128], index: 4, kind: input, shape index: {}]   ;;  %s1543_s5 = inlined_call_operand.hbm [shape: f32[5,1,128], index: 5, kind: output, shape index: {}]  }
   0x1   :  { %s10_s20 = sshll.u32 %s1538_s0, 4  ;;  %s11_s20 = int_to_ptr.vmem [resolvable:$true] %s10_s20 }
   0x2   :  { %s1115_s21 = scalar_lea.vmem %s11_s20, 16  ;;  %p1120_p1 = scmp.lt.s32.totalorder %s11_s20, %s11_s20 }
   0x3   :  { %p1116_p0 = scmp.ne.s32.totalorder %s11_s20, %s1115_s21  ;;  %p1121_p2 = scmp.lt.s32.totalorder %s1115_s21, %s1115_s21 }
   0x5   :  { %p1122_p3 = por %p1121_p2, %p1120_p1 }
   0x7   :  { %p1123_p4 = pnand %p1122_p3, %p1116_p0 }
   0x9   :  { %1126 = shalt.err (!%p1123_p4)  }
   0xa   :  { %s1225_s22 = smov [#allocation4]  }
   0xb   :  { %13 = dma.vmem_to_smem %s11_s20, 16, %s1225_s22, [#allocation3] }
   0xc   :  { %1199 = dma.done.wait [#allocation3], 16 }
   0xd   :  { %1200 = vsyncadd [#allocation3], 4294967280 }
   0xe   :  { %15 = sfence }
   0xf   :  { %16 = vsyncpa [#allocation6], 0 }
  0x10   :  { %17 = vsyncpa [#allocation7], 0 }
  0x11   :  { %19 = vsyncpa [#allocation7 + $0x1], 0  ;;  %s1271_s23 = smov 0   ;;  %s1273_s24 = smov 0  }
  0x12   :  { %s1275_s0 = smov 0   ;;  %s1277_s25 = smov 0  }
  0x13 LB: > { %s1292_s26 = sadd.s32 4294967295, %s1223_s25   ;;  %s806_s27 = sadd.s32 4294967294, %s1223_s25   ;;  %s1223_s25 = sphi %s1277_s25, %s1560_s25   ;;  %s1219_s0 = sphi %s1275_s0, %s1559_s0   ;;  %s1215_s24 = sphi %s1273_s24, %s1558_s24   ;;  %s1211_s23 = sphi %s1271_s23, %s1557_s23  }
  0x14   : > { %s1296_s28 = sadd.s32 1, %s1223_s25   ;;  %s123_s29 = sadd.s32 1, %s1219_s0 }
  0x15   : > { %s120_s30 = ssub.s32 %s1223_s25, %s1296_s28  ;;  %p133_p5 = scmp.ne.s32.totalorder %s1219_s0, %s1215_s24 }
  0x16   : > { %p121_p6 = scmp.eq.s32.totalorder %s120_s30, 0  ;;  %p134_p7 = scmp.eq.s32.totalorder %s1292_s26, 4 }
  0x17   : > { %p139_p8 = scmp.ne.s32.totalorder %s1215_s24, %s1211_s23  ;;  %p140_p9 = scmp.eq.s32.totalorder %s806_s27, 4 }
  0x18   : > { %s1307_s6 = scalar_select %p121_p6, %s1219_s0, %s123_s29  }
  0x19   : > { %p1309_p10 = por %p134_p7, %p133_p5  ;;  %p1313_p11 = por %p140_p9, %p139_p8 }
  0x1a   : > { %p807_p12 = scmp.ge.s32.totalorder %s1223_s25, 1  ;;  %p147_p13 = scmp.lt.s32.totalorder %s1223_s25, 6 }
  0x1b   : > { %s1547_s7 = scalar_select %p1309_p10, 1, 0 }
  0x1c   : > { %s1548_s8 = scalar_select %p1313_p11, 1, 0 }
  0x1d   : > { %p1544_p1 = scmp.eq.s32.totalorder %s1292_s26, 0  ;;  %p1321_p2 = pnand %p807_p12, %p147_p13 }
  0x1e   : > { %s1226_s10 = smov [#allocation5]   ;;  %s1127_s15 = scalar_lea.hbm %s1542_s4, 4096 }
  0x1f   : > { %s1549_s9 = scalar_select %p1321_p2, 1, 0 }
  0x20   : > { %s165_s11 = sshll.u32 %s1226_s10, 4  ;;  %p1046_p3 = pneg %p1321_p2  ;;  %s166_s11 = int_to_ptr.vmem [resolvable:$true] %s165_s11 }
  0x21   : > { %p1128_p5 = scmp.ne.s32.totalorder %s1542_s4, %s1127_s15  ;;  %p1134_p9 = scmp.lt.u32.totalorder %s1127_s15, %s1542_s4 }
  0x22   : > { %p1329_p4 = pnand %p1544_p1, %p1046_p3 }
  0x24   : > { %p1129_p6 = pneg %p1329_p4 }
  0x26   : > { %p1130_p7 = pnand %p1129_p6, %p1128_p5 }
  0x28   : > { %p1131_p8 = pneg %p1130_p7 }
  0x2a   : > { %p1136_p12 = pnand %p1134_p9, %p1131_p8 }
  0x2c   : > { %1139 = shalt.err (!%p1136_p12)
}
  0x2d   : > { %s1140_s20 = scalar_lea.vmem %s166_s11, 4096  ;;  %p1148_p1 = scmp.lt.s32.totalorder %s166_s11, %s166_s11 }
  0x2e   : > { %p1141_p13 = scmp.ne.s32.totalorder %s166_s11, %s1140_s20  ;;  %p1149_p11 = scmp.lt.s32.totalorder %s1140_s20, %s1140_s20 }
  0x30   : > { %p1143_p3 = pnand %p1141_p13, %p1129_p6  ;;  %p1150_p10 = por %p1149_p11, %p1148_p1 }
  0x32   : > { %p1144_p0 = pneg %p1143_p3 }
  0x34   : > { %p1151_p2 = pnand %p1150_p10, %p1144_p0 }
  0x36   : > { %1154 = shalt.err (!%p1151_p2)
}
  0x37   : > { %s1227_s21 = smov 128   ;;  %s1228_s22 = smov 8  }
  0x38   : > { %1049 = dma.hbm_to_vmem [thread:$0]  (!%p1329_p4), %s1542_s4, 4096, %s166_s11, [#allocation6], %s1227_s21, %s1227_s21, %s1228_s22  }
  0x39   : > { %p1551_p5 = scmp.ne.s32.totalorder %s1549_s9, 0 }
  0x3a   : > { %p1552_p7 = scmp.eq.s32.totalorder (!%p1551_p5), %s1292_s26, 0 }
  0x3b   : > { %189 = sbr.rel (%p1551_p5) target bundleno = 2509 (0x9cd), region = 36 }
  0x42   : > { %1202 = dma.done.wait (%p1552_p7), [#allocation6], 4096   ;;  %p1553_p6 = pmov %p1552_p7 }
  0x43   : > { %s211_s30 = sand.u32 1, %s1215_s24   ;;  %s213_s10 = sld [smem:[#allocation4 + %s1292_s26]] }
  0x44   : > { %1204 = vsyncadd (%p1553_p6), [#allocation6], 4294963200  ;;  %s1365_s13 = scalar_lea.vmem [#allocation8], %s211_s30  ;;  %p1554_p11 = scmp.ne.s32.totalorder %s1292_s26, 0 }
  0x45   : > { %v222_v0 = vld [vmem:[%s1540_s2] sm:$0x1] (!%p1554_p11)  ;;  %vm223_vm0 = vcmask (!%p1554_p11), 253952  }
  0x46   : > { %221 = sbr.rel (%p1554_p11) target bundleno = 77 (0x4d), region = 44  ;;  %224 = vst.msk [vmem:[#allocation2] sm:$0x1] (!%p1554_p11), %vm223_vm0, %v222_v0 }
  0x49   : > { %p214_p10 = scmp.lt.s32.totalorder %s213_s10, 39 }
  0x4b   : > { %s1562_s10 = smov (!%p214_p10, %s213_s10), 39 }
  0x4c   : > { %s216_s9 = scalar_lea.vmem %s1539_s1, %s1562_s10 }
  0x4d PF: > { %v813_v1 = vld [vmem:[#allocation2] ss:$0 sm:$0xff]  ;;  %v239_v2 = vld [vmem:[#allocation5] sm:$0xff]  ;;  %v240_v3 = vld [vmem:[#allocation5 + $0x8] sm:$0xff]  ;;  %s1229_s16 = smov 32   ;;  %v1230_v4 = vmov 0.0|0.0   ;;  %v227_v19 = vlaneseq }
  0x4e   : > { %234 = vrot.lane.b32.xlu0 %v813_v1, %s1229_s16  ;;  %974 = vmatprep.subr.bf16.mxu0 %v1230_v4  ;;  %v975_v5 = vpack.c.bf16 %v240_v3, %v239_v2  ;;  %v241_v6 = vld [vmem:[#allocation5 + $0x10] sm:$0xff]  ;;  %v242_v7 = vld [vmem:[#allocation5 + $0x18] sm:$0xff]  ;;  %vm1231_vm1 = vmmov 0   ;;  %v1232_v8 = vmov 0.0   ;;  %v243_v10 = vld [vmem:[#allocation5 + $0x20] sm:$0xff]  ;;  %vm237_vm2 = vcmask 261120  }
  0x4f   : > { %887 = vmatprep.mubr.msk.f32.mxu0 %vm1231_vm1, %v1232_v8  ;;  %986 = vmatprep.subr.bf16.mxu1 %v1230_v4  ;;  %v978_v9 = vpack.c.bf16 %v242_v7, %v241_v6  ;;  %v244_v11 = vld [vmem:[#allocation5 + $0x28] sm:$0xff]  ;;  %v245_v13 = vld [vmem:[#allocation5 + $0x30] sm:$0xff]  ;;  %v246_v14 = vld [vmem:[#allocation5 + $0x38] sm:$0xff]  ;;  %vm248_vm3 = vcmask 523264   ;;  %v1398_v20 = vand.u32 127, %v227_v19  ;;  %vm324_vm5 = vcmask 1040384  }
  0x50   : > { %976 = vmatpush3.bf16.msra.mxu0 %v975_v5  ;;  %922 = vmatprep.mubr.msk.f32.mxu1 %vm1231_vm1, %v1232_v8  ;;  %v981_v12 = vpack.c.bf16 %v244_v11, %v243_v10  ;;  %v984_v15 = vpack.c.bf16 %v246_v14, %v245_v13  ;;  %v1388_v16 = vld [vmem:[%s216_s9] sm:$0x1]  ;;  %v247_v21 = vld [vmem:[#allocation5 + $0x40] sm:$0x1]  ;;  %v337_v28 = vld [vmem:[%s1541_s3 + $0x8] sm:$0xff]  ;;  %s1233_s27 = smov 64  }
  0x51   : > { %977 = vmatprep.subr.bf16.mxu0 %v1230_v4  ;;  %vm322_vm4 = vcmp.lt.s32.totalorder %v1398_v20, 26  ;;  %v336_v27 = vld [vmem:[%s1541_s3] sm:$0xff]  ;;  %v338_v29 = vld [vmem:[%s1541_s3 + $0x10] sm:$0xff]  ;;  %v339_v31 = vld [vmem:[%s1541_s3 + $0x18] sm:$0xff]  ;;  %vm622_vm6 = vcmask 253952   ;;  %vm701_vm7 = vcmp.lt.s32.totalorder %v1398_v20, 40 }
  0x52   : > { %v987_v30 = vpack.c.bf16 %v337_v28, %v336_v27  ;;  %v990_v32 = vpack.c.bf16 %v339_v31, %v338_v29  ;;  %v340_v33 = vld [vmem:[%s1541_s3 + $0x20] sm:$0xff]  ;;  %v341_v34 = vld [vmem:[%s1541_s3 + $0x28] sm:$0xff]  ;;  %v342_v36 = vld [vmem:[%s1541_s3 + $0x30] sm:$0xff]  ;;  %s1235_s29 = smov 8   ;;  %s1236_s10 = smov 72   ;;  %vm722_vm8 = vcmask 326656  }
  0x53   : > { %v993_v35 = vpack.c.bf16 %v341_v34, %v340_v33  ;;  %v343_v37 = vld [vmem:[%s1541_s3 + $0x38] sm:$0xff]  ;;  %v344_v39 = vld [vmem:[%s1541_s3 + $0x40] sm:$0xff]  ;;  %v345_v40 = vld [vmem:[%s1541_s3 + $0x48] sm:$0xff]  ;;  %vm724_vm9 = vcmask 588800   ;;  %s819_s12 = sshll.u32 %s1292_s26, 4  ;;  %s742_s11 = sshll.u32 %s1365_s13, 4  ;;  %s1495_s11 = int_to_ptr.vmem [resolvable:$true] %s742_s11 }
  0x54   : > { %979 = vmatpush3.bf16.msra.mxu0 %v978_v9  ;;  %988 = vmatpush3.bf16.msra.mxu1 %v987_v30  ;;  %v996_v38 = vpack.c.bf16 %v343_v37, %v342_v36  ;;  %v999_v41 = vpack.c.bf16 %v345_v40, %v344_v39  ;;  %v346_v47 = vld [vmem:[%s1541_s3 + $0x50] sm:$0xff]  ;;  %v347_v48 = vld [vmem:[%s1541_s3 + $0x58] sm:$0xff]  ;;  %v348_v50 = vld [vmem:[%s1541_s3 + $0x60] sm:$0xff]  ;;  %vm726_vm10 = vcmask 801792   ;;  %s1493_s15 = scalar_lea.hbm %s1543_s5, %s819_s12  ;;  %s730_s17 = scalar_lea.sflag [#allocation7], %s211_s30 }
  0x55   : > { %980 = vmatprep.subr.bf16.mxu0 %v1230_v4  ;;  %989 = vmatprep.subr.bf16.mxu1 %v1230_v4  ;;  %v1002_v49 = vpack.c.bf16 %v347_v48, %v346_v47  ;;  %v349_v51 = vld [vmem:[%s1541_s3 + $0x68] sm:$0xff]  ;;  %v350_v53 = vld [vmem:[%s1541_s3 + $0x70] sm:$0xff]  ;;  %v351_v54 = vld [vmem:[%s1541_s3 + $0x78] sm:$0xff]  ;;  %s1155_s26 = scalar_lea.vmem %s1495_s11, 16  ;;  %p1555_p1 = scmp.ne.s32.totalorder %s1547_s7, 0 }
  0x56   : > { %v1005_v52 = vpack.c.bf16 %v349_v51, %v348_v50  ;;  %v1008_v55 = vpack.c.bf16 %v351_v54, %v350_v53  ;;  %v427_v59 = vld [vmem:[#allocation5 + $0x48] sm:$0xff]  ;;  %v428_v60 = vld [vmem:[#allocation5 + $0x50] sm:$0xff]  ;;  %v429_v61 = vld [vmem:[#allocation5 + $0x58] sm:$0xff]  ;;  %p1156_p0 = scmp.ne.s32.totalorder %s1495_s11, %s1155_s26  ;;  %s1237_s18 = smov [#allocation8]  }
  0x57   : > { %v1011_v62 = vpack.c.bf16 %v428_v60, %v427_v59  ;;  %v430_v63 = vld [vmem:[#allocation5 + $0x60] sm:$0xff]  ;;  %v431_v1 = vld [vmem:[#allocation5 + $0x68] sm:$0xff]  ;;  %v432_v2 = vld [vmem:[#allocation5 + $0x70] sm:$0xff]  ;;  %s1159_s19 = sshll.u32 %s1237_s18, 4  ;;  %s1160_s19 = int_to_ptr.vmem [resolvable:$false] %s1159_s19 }
  0x58   : > { %982 = vmatpush3.bf16.msra.mxu0 %v981_v12  ;;  %991 = vmatpush3.bf16.msra.mxu1 %v990_v32  ;;  %v1014_v0 = vpack.c.bf16 %v430_v63, %v429_v61  ;;  %v1017_v3 = vpack.c.bf16 %v432_v2, %v431_v1  ;;  %v433_v5 = vld [vmem:[#allocation5 + $0x78] sm:$0xff]  ;;  %v434_v6 = vld [vmem:[#allocation5 + $0x80] sm:$0xff]  ;;  %v511_v11 = vld [vmem:[#allocation5 + $0x90] sm:$0xff]  ;;  %p1157_p2 = pnand %p1156_p0, %p1555_p1  ;;  %s1161_s20 = scalar_lea.vmem %s1160_s19, 32 }
  0x59   : > { %983 = vmatprep.subr.bf16.mxu0 %v1230_v4  ;;  %992 = vmatprep.subr.bf16.mxu1 %v1230_v4  ;;  %v1020_v7 = vpack.c.bf16 %v434_v6, %v433_v5  ;;  %v512_v12 = vld [vmem:[#allocation5 + $0x98] sm:$0xff]  ;;  %v435_v27 = vld [vmem:[#allocation5 + $0x88] sm:$0x1]  ;;  %v519_v32 = vld [vmem:[#allocation5 + $0xd0] sm:$0x1]  ;;  %p1162_p8 = scmp.lt.s32.totalorder %s1495_s11, %s1160_s19  ;;  %p1163_p9 = scmp.lt.s32.totalorder %s1161_s20, %s1155_s26 }
  0x5a   : > { %v1023_v13 = vpack.c.bf16 %v512_v12, %v511_v11  ;;  %v627_v48 = vld [vmem:[#allocation5 + $0xf0] sm:$0xff]  ;;  %p1158_p4 = pneg %p1157_p2 }
  0x5b   : > { %p1164_p12 = por %p1163_p9, %p1162_p8 }
  0x5c   : > { %985 = vmatpush3.bf16.msra.mxu0 %v984_v15  ;;  %994 = vmatpush3.bf16.msra.mxu1 %v993_v35  ;;  %v513_v15 = vld [vmem:[#allocation5 + $0xa0] sm:$0xff] }
  0x5d   : > { %1010 = vmatprep.subr.bf16.mxu0 %v1230_v4  ;;  %995 = vmatprep.subr.bf16.mxu1 %v1230_v4  ;;  %p1165_p13 = pnand %p1164_p12, %p1158_p4 }
  0x60   : > { %997 = vmatpush3.bf16.msra.mxu1 %v996_v38 }
  0x61   : > { %998 = vmatprep.subr.bf16.mxu1 %v1230_v4 }
  0x64   : > { %1000 = vmatpush3.bf16.msra.mxu1 %v999_v41 }
  0x65   : > { %1001 = vmatprep.subr.bf16.mxu1 %v1230_v4 }
  0x68   : > { %1003 = vmatpush3.bf16.msra.mxu1 %v1002_v49 }
  0x69   : > { %1004 = vmatprep.subr.bf16.mxu1 %v1230_v4 }
  0x6c   : > { %1006 = vmatpush3.bf16.msra.mxu1 %v1005_v52 }
  0x6d   : > { %1007 = vmatprep.subr.bf16.mxu1 %v1230_v4 }
  0x70   : > { %1009 = vmatpush3.bf16.msra.mxu1 %v1008_v55 }
  0x71   : > { %1034 = vmatprep.subr.bf16.mxu1 %v1230_v4 }
  0xc0   : > { %v1390_v17 = vpop.permute.xlu0 %234 }
  0xc1   : > { %v238_v18 = vsel %vm237_vm2, %v1388_v16, %v1390_v17 }
  0xc2   : > { %888 = vmatmul.mubr.msk.f32.vlgmr.msra.gmra.mrb[0].mxu0 %vm248_vm3, %v238_v18  ;;  %v514_v18 = vld [vmem:[#allocation5 + $0xa8] sm:$0xff] }
  0xc3   : > { %941 = vmatprep.mubr.msk.f32.mxu0 %vm1231_vm1, %v1232_v8  ;;  %1012 = vmatpush3.bf16.msra.mxu0 %v1011_v62 }
  0xc4   : > { %1013 = vmatprep.subr.bf16.mxu0 %v1230_v4 }
  0xc7   : > { %1015 = vmatpush3.bf16.msra.mxu0 %v1014_v0 }
  0xc8   : > { %1016 = vmatprep.subr.bf16.mxu0 %v1230_v4 }
  0xcb   : > { %1018 = vmatpush3.bf16.msra.mxu0 %v1017_v3 }
  0xcc   : > { %1019 = vmatprep.subr.bf16.mxu0 %v1230_v4 }
  0xcf   : > { %1021 = vmatpush3.bf16.msra.mxu0 %v1020_v7 }
  0xd0   : > { %1022 = vmatprep.subr.bf16.mxu0 %v1230_v4 }
 0x195   : > { %v318_v22 = vpop.f32.mrb[0].mxu0 }
 0x196   : > { %v319_v23 = vadd.f32 %v318_v22, %v247_v21  ;;  %v889_v24 = vpop.f32.mrb[1].mxu0  ;;  %v1026_v21 = vpack.c.bf16 %v514_v18, %v513_v15  ;;  %v515_v22 = vld [vmem:[#allocation5 + $0xb0] sm:$0xff] }
 0x198   : > { %v323_v25 = vsel %vm322_vm4, %v319_v23, -1e+30  ;;  %v516_v23 = vld [vmem:[#allocation5 + $0xb8] sm:$0xff] }
 0x199   : > { %v325_v26 = vsel %vm324_vm5, %v323_v25, -inf  ;;  %v1029_v24 = vpack.c.bf16 %v516_v23, %v515_v22 }
 0x19a   : > { %326 = vmax.xlane.f32.xlu0 %v325_v26 }
 0x227   : > { %v327_v42 = vpop.xlane.xlu0 %326 }
 0x228   : > { %v328_v43 = vsub.f32 %v323_v25, %v327_v42  ;;  %v517_v25 = vld [vmem:[#allocation5 + $0xc0] sm:$0xff] }
 0x22a   : > { %v329_v44 = vmul.f32 1.442695, %v328_v43 }
 0x22c   : > { %1101 = vpow2.f32 %v329_v44  ;;  %v624_v44 = vld [vmem:[#allocation5 + $0xd8] sm:$0xff] }
 0x236   : > { %v1102_v45 = vpop.eup %1101 }
 0x237   : > { %v331_v46 = vsel %vm324_vm5, %v1102_v45, 0.0 }
 0x238   : > { %332 = vadd.xlane.f32.xlu1 %v331_v46  ;;  %v626_v46 = vld [vmem:[#allocation5 + $0xe8] sm:$0xff] }
 0x239   : > { %v1038_v49 = vpack.c.bf16 %v627_v48, %v626_v46 }
 0x2c5   : > { %v333_v56 = vpop.xlane.xlu1 %332 }
 0x2c6   : > { %1103 = vrcp.f32 %v333_v56 }
 0x2d0   : > { %v1104_v57 = vpop.eup %1103 }
 0x2d1   : > { %v1459_v58 = vmul.f32 %v1104_v57, %v1102_v45  ;;  %v625_v45 = vld [vmem:[#allocation5 + $0xe0] sm:$0xff]  ;;  %v628_v57 = vld [vmem:[#allocation5 + $0xf8] sm:$0x1] }
 0x2d2   : > { %v1035_v47 = vpack.c.bf16 %v625_v45, %v624_v44 }
 0x2d3   : > { %923 = vmatmul.mubr.f32.vlgmr.msra.gmra.mrb[0].mxu1 %v1459_v58 }
 0x2d4   : > { %971 = vmatprep.mubr.msk.f32.mxu1 %vm1231_vm1, %v1232_v8  ;;  %1036 = vmatpush3.bf16.msra.mxu1 %v1035_v47 }
 0x2d5   : > { %1037 = vmatprep.subr.bf16.mxu1 %v1230_v4 }
 0x2d8   : > { %1039 = vmatpush3.bf16.msra.mxu1 %v1038_v49 }
 0x3a6   : > { %v418_v9 = vpop.f32.mrb[0].mxu1 }
 0x3a7   : > { %423 = vrot.lane.b32.xlu1 %v418_v9, %s1229_s16  ;;  %v924_v10 = vpop.f32.mrb[1].mxu1 }
 0x419   : > { %v424_v14 = vpop.permute.xlu1 %423 }
 0x41a   : > { %v426_v19 = vsel %vm237_vm2, %v1388_v16, %v424_v14  ;;  %v518_v16 = vld [vmem:[#allocation5 + $0xc8] sm:$0xff] }
 0x41b   : > { %942 = vmatmul.mubr.msk.f32.vlgmr.msra.gmra.mrb[2].mxu0 %vm248_vm3, %v426_v19  ;;  %v1032_v26 = vpack.c.bf16 %v518_v16, %v517_v25 }
 0x41c   : > { %1024 = vmatpush3.bf16.msra.mxu0 %v1023_v13  ;;  %960 = vmatprep.mubr.msk.f32.mxu0 %vm1231_vm1, %v1232_v8 }
 0x41d   : > { %1025 = vmatprep.subr.bf16.mxu0 %v1230_v4 }
 0x420   : > { %1027 = vmatpush3.bf16.msra.mxu0 %v1026_v21 }
 0x421   : > { %1028 = vmatprep.subr.bf16.mxu0 %v1230_v4 }
 0x424   : > { %1030 = vmatpush3.bf16.msra.mxu0 %v1029_v24 }
 0x425   : > { %1031 = vmatprep.subr.bf16.mxu0 %v1230_v4 }
 0x428   : > { %1033 = vmatpush3.bf16.msra.mxu0 %v1032_v26 }
 0x4ee   : > { %v505_v28 = vpop.f32.mrb[2].mxu0 }
 0x4ef   : > { %v506_v29 = vadd.f32 %v505_v28, %v435_v27  ;;  %v943_v30 = vpop.f32.mrb[3].mxu0 }
 0x4f1   : > { %v509_v8 = vmax.f32 %v506_v29, 0.0 }
 0x4f3   : > { %v510_v31 = vsel %vm237_vm2, %v509_v8, %v1390_v17 }
 0x4f4   : > { %961 = vmatmul.mubr.msk.f32.vlgmr.msra.gmra.mrb[4].mxu0 %vm248_vm3, %v510_v31 }
 0x5c7   : > { %v589_v33 = vpop.f32.mrb[4].mxu0 }
 0x5c8   : > { %v590_v34 = vadd.f32 %v589_v33, %v519_v32  ;;  %v962_v35 = vpop.f32.mrb[5].mxu0 }
 0x5ca   : > { %600 = vrot.lane.b32.xlu1 %v590_v34, %s1229_s16  ;;  %v817_v36 = vmul.f32 -1.442695, %v590_v34  ;;  %s1234_s16 = smov 96  }
 0x5cc   : > { %1105 = vpow2.f32 %v817_v36 }
 0x5d6   : > { %v1106_v37 = vpop.eup %1105 }
 0x5d7   : > { %v596_v38 = vadd.f32 1.0, %v1106_v37 }
 0x5d9   : > { %1107 = vrcp.f32 %v596_v38 }
 0x5e3   : > { %v1108_v39 = vpop.eup %1107 }
 0x5e4   : > { %v610_v51 = vsub.f32 1.0, %v1108_v39  ;;  %v616_v53 = vmul.f32 %v1108_v39, %v1390_v17 }
 0x63c   : > { %v601_v40 = vpop.permute.xlu1 %600 }
 0x63d   : > { %v603_v41 = vmul.f32 %v1108_v39, %v601_v40 }
 0x63f   : > { %605 = vrot.lane.b32.xlu1 %v603_v41, %s1233_s27 }
 0x6b1   : > { %v606_v42 = vpop.permute.xlu1 %605 }
 0x6b2   : > { %v608_v43 = vadd.f32 %v606_v42, %v590_v34 }
 0x6b4   : > { %1109 = vtanh.f32 %v608_v43 }
 0x6be   : > { %v1110_v50 = vpop.eup %1109 }
 0x6bf   : > { %612 = vrot.lane.b32.xlu1 %v1110_v50, %s1234_s16 }
 0x731   : > { %v613_v52 = vpop.permute.xlu1 %612 }
 0x732   : > { %v615_v54 = vmul.f32 %v613_v52, %v610_v51 }
 0x734   : > { %v617_v55 = vadd.f32 %v616_v53, %v615_v54 }
 0x736   : > { %619 = vrot.lane.b32.xlu1 %v617_v55, %s1234_s16 }
 0x7a8   : > { %v620_v56 = vpop.permute.xlu1 %619 }
 0x7a9   : > { %623 = vst.msk [vmem:[#allocation2] sm:$0x1] %vm622_vm6, %v620_v56  ;;  %972 = vmatmul.mubr.msk.f32.vlgmr.msra.gmra.mrb[2].mxu1 %vm237_vm2, %v620_v56 }
 0x87c   : > { %v697_v59 = vpop.f32.mrb[2].mxu1 }
 0x87d   : > { %v698_v4 = vadd.f32 %v697_v59, %v628_v57  ;;  %v973_v60 = vpop.f32.mrb[3].mxu1 }
 0x87f   : > { %v702_v61 = vsel %vm701_vm7, %v698_v4, -1e+30 }
 0x880   : > { %v703_v62 = vsel %vm324_vm5, %v702_v61, -inf }
 0x881   : > { %704 = vmax.xlane.f32.xlu0 %v703_v62 }
 0x897   : > { %715 = vrot.lane.b32.xlu0 %v617_v55, %s1235_s29 }
 0x89b   : > { %719 = vrot.lane.b32.xlu0 %v1459_v58, %s1236_s10 }
 0x90e   : > { %v705_v17 = vpop.xlane.xlu0 %704 }
 0x90f   : > { %v706_v63 = vsub.f32 %v702_v61, %v705_v17 }
 0x911   : > { %v707_v0 = vmul.f32 1.442695, %v706_v63 }
 0x912   : > { %v716_v3 = vpop.permute.xlu0 %715 }
 0x913   : > { %1111 = vpow2.f32 %v707_v0 }
 0x916   : > { %v720_v7 = vpop.permute.xlu0 %719 }
 0x91d   : > { %v1112_v1 = vpop.eup %1111 }
 0x91e   : > { %v709_v20 = vsel %vm324_vm5, %v1112_v1, 0.0 }
 0x91f   : > { %710 = vadd.xlane.f32.xlu1 %v709_v20 }
 0x9ac   : > { %v711_v2 = vpop.xlane.xlu1 %710 }
 0x9ad   : > { %1113 = vlog2.f32 %v711_v2 }
 0x9b7   : > { %v1114_v5 = vpop.eup %1113 }
 0x9b8   : > { %v713_v6 = vmul.f32 0.6931472, %v1114_v5 }
 0x9ba   : > { %v714_v58 = vsub.f32 %v706_v63, %v713_v6 }
 0x9bc   : > { %v723_v9 = vsel %vm722_vm8, %v714_v58, %v716_v3 }
 0x9bd   : > { %v725_v10 = vsel %vm724_vm9, %v723_v9, %v720_v7 }
 0x9be   : > { %v727_v11 = vsel %vm726_vm10, %v725_v10, 0.0 }
 0x9bf   : > { %728 = vst [vmem:[%s1365_s13] sm:$0x1] %v727_v11 }
 0x9c0   : > { %1168 = shalt.err (!%p1165_p13)
}
 0x9c1   : > { %s1169_s30 = scalar_lea.hbm %s1493_s15, 16  ;;  %s1173_s22 = scalar_lea.hbm %s1543_s5, 80 }
 0x9c2   : > { %p1170_p3 = scmp.ne.s32.totalorder %s1493_s15, %s1169_s30  ;;  %p1174_p6 = scmp.lt.u32.totalorder %s1493_s15, %s1543_s5 }
 0x9c3   : > { %p1175_p10 = scmp.lt.u32.totalorder %s1173_s22, %s1169_s30  ;;  %p1177_p0 = scmp.lt.u32.totalorder %s1169_s30, %s1493_s15 }
 0x9c4   : > { %p1171_p5 = pnand %p1170_p3, %p1555_p1 }
 0x9c5   : > { %p1176_p11 = por %p1175_p10, %p1174_p6 }
 0x9c6   : > { %p1172_p7 = pneg %p1171_p5 }
 0x9c7   : > { %p1178_p2 = por %p1177_p0, %p1176_p11 }
 0x9c9   : > { %p1179_p4 = pnand %p1178_p2, %p1172_p7 }
 0x9cb   : > { %1182 = shalt.err (!%p1179_p4)
}
 0x9cc   : > { %1044 = dma.vmem_to_hbm [thread:$0]  (%p1555_p1), %s1495_s11, 16, %s1493_s15, %s730_s17  }
 0x9cd PF: > { %p1056_p8 = scmp.ge.s32.totalorder %s1223_s25, 2  ;;  %s754_s29 = sand.u32 1, %s1211_s23  }
 0x9ce   : > { %p1556_p9 = scmp.ne.s32.totalorder %s1548_s8, 0  ;;  %s755_s10 = scalar_lea.sflag [#allocation7], %s754_s29 }
 0x9d0   : > { %p1051_p12 = pnand %p1056_p8, %p1556_p9 }
 0x9d2   : > { %1206 = dma.done.wait (!%p1051_p12), %s755_s10, 16  }
 0x9d3   : > { %1208 = vsyncadd (!%p1051_p12), %s755_s10, 4294967280  ;;  %p22_p13 = scmp.ge.s32.totalorder %s1296_s28, 7   ;;  %s1557_s23 = smov %s1215_s24 }
 0x9d4   : > { %s1558_s24 = smov %s1219_s0  ;;  %s1559_s0 = smov %s1307_s6 }
 0x9d5   : > { %s1560_s25 = smov %s1296_s28  ;;  %24 = sbr.rel (!%p22_p13) target bundleno = 19 (0x13), region = 80 }
 0x9dc   :  { %759 = vsyncpa [#allocation6], 1 }
 0x9dd   :  { %761 = vsyncpa [#allocation6 + $0x1], 1 }
 0x9de   :  { %762 = vsyncpa [#allocation7], 1 }
 0x9df   :  { %764 = vsyncpa [#allocation7 + $0x1], 1 }

</bundles_post_ra>
